<compile_context>
chip_gen: v7x
topology: tpu7x:2x2x1
jax: 0.10.0
libtpu: 0.0.40
codegen_flags: <defaults>
</compile_context>

<pallas_src>
import jax
import jax.numpy as jnp
from jax.experimental import pallas as pl
from jax.experimental.pallas import tpu as pltpu

_LANE = 128          # lane width (last-dim granularity)
_TB_MAX = 32768      # max lanes per block: 2 * 32768 * 4B = 256 KiB per buffer


def _round_up(n, m):
    return ((n + m - 1) // m) * m


def _het_spindly_kernel(w_ref, x_ref, o_ref):
    # w_ref: (2,) in SMEM   -- [lin1.weight, lin2.weight]
    # x_ref: (2, TB) in VMEM -- row 0: input[:, 0], row 1: input[:, 1] (batch on lanes)
    # o_ref: (2, TB) in VMEM -- row 0: out1,        row 1: out2
    o_ref[0:1, :] = x_ref[0:1, :] * w_ref[0]
    o_ref[1:2, :] = jnp.exp(x_ref[1:2, :] * w_ref[1])


def het_spindly_head(x, w):
    """x: (B, C) float32 with C >= 2. w: (2,) float32 = [lin1.weight, lin2.weight].

    Returns (B, 2) = cat([w[0]*x[:,0:1], exp(w[1]*x[:,1:2])], axis=1).
    """
    B, C = x.shape
    assert C >= 2, "HetSpindlyHead needs at least 2 input channels"
    # TODO(synk): for very small B a plain fused XLA elementwise op is faster than
    # any kernel launch; dispatch to that path at the call site if desired.

    # Lane-dense repack in the wrapper: keep only the two used columns and put
    # the batch dimension on lanes.
    cols = x[:, :2]                                  # (B, 2) — drop unused channels
    tb = min(_TB_MAX, _round_up(B, _LANE))           # lanes per block (multiple of 128)
    padded_b = _round_up(B, tb)
    if padded_b != B:
        cols = jnp.pad(cols, ((0, padded_b - B), (0, 0)))
    xt = cols.T                                      # (2, padded_b), batch on lanes

    grid = (padded_b // tb,)
    out_t = pl.pallas_call(
        _het_spindly_kernel,
        out_shape=jax.ShapeDtypeStruct((2, padded_b), x.dtype),
        grid=grid,
        in_specs=[
            pl.BlockSpec(memory_space=pltpu.MemorySpace.SMEM),   # packed weights
            pl.BlockSpec((2, tb), lambda i: (0, i)),             # lane-dense x tile
        ],
        out_specs=pl.BlockSpec((2, tb), lambda i: (0, i)),
        compiler_params=pltpu.CompilerParams(
            dimension_semantics=("parallel",),
        ),
    )(w, xt)

    return out_t[:, :B].T                            # back to (B, 2)


if __name__ == "__main__":
    key = jax.random.PRNGKey(0)
    kx, kw = jax.random.split(key)

    B, C = 8, 4
    x = jax.random.normal(kx, (B, C), dtype=jnp.float32)

    # Parameters mirroring the module's __init__:
    #   lin1.weight: (1,1) default init -> deterministic random value here
    #   lin2.weight: (1,1) filled with 0.0
    w1 = jax.random.uniform(kw, (), dtype=jnp.float32, minval=-1.0, maxval=1.0)
    w2 = jnp.float32(0.0)
    w = jnp.stack([w1, w2])                          # (2,) packed scalar weights

    out = het_spindly_head(x, w)
    out = jax.block_until_ready(out)

    # Reference (plain JAX) for correctness check.
    ref = jnp.concatenate(
        [x[:, 0:1] * w[0], jnp.exp(x[:, 1:2] * w[1])], axis=1
    )
    assert out.shape == (B, 2)
    assert jnp.allclose(out, ref, atol=1e-6), "mismatch vs reference"
    print("KERNEL_OK")
</pallas_src>

<mosaic_0001>
module attributes {stable_mosaic.version = 11 : i64} {
  func.func @_het_spindly_kernel(%arg0: i32, %arg1: memref<2xf32, #tpu.memory_space<smem>>, %arg2: memref<2x128xf32, #tpu.memory_space<vmem>>, %arg3: memref<2x128xf32, #tpu.memory_space<vmem>>) attributes {dimension_semantics = [#tpu.dimension_semantics<parallel>], iteration_bounds = array<i64: 1>, scalar_prefetch = 0 : i64, scratch_operands = 0 : i64, tpu.core_type = #tpu.core_type<tc>, window_params = [{transform_indices = @transform_0, window_bounds = array<i64: 2>}, {transform_indices = @transform_1, window_bounds = array<i64: 2, 128>}, {transform_indices = @transform_2, window_bounds = array<i64: 2, 128>}]} {
    %c0 = arith.constant 0 : index
    %c0_0 = arith.constant 0 : index
    %0 = vector.load %arg2[%c0, %c0_0] : memref<2x128xf32, #tpu.memory_space<vmem>>, vector<1x128xf32>
    %c0_1 = arith.constant 0 : index
    %1 = memref.load %arg1[%c0_1] : memref<2xf32, #tpu.memory_space<smem>>
    %2 = vector.broadcast %1 : f32 to vector<1x128xf32>
    %3 = arith.mulf %0, %2 : vector<1x128xf32>
    %c0_2 = arith.constant 0 : index
    %c0_3 = arith.constant 0 : index
    %4 = vector.load %arg3[%c0_2, %c0_3] : memref<2x128xf32, #tpu.memory_space<vmem>>, vector<1x128xf32>
    tpu.vector_store %arg3[%c0_2, %c0_3], %3 {strides = array<i32>} : memref<2x128xf32, #tpu.memory_space<vmem>>, vector<1x128xf32>,
    %c1 = arith.constant 1 : index
    %c0_4 = arith.constant 0 : index
    %5 = vector.load %arg2[%c1, %c0_4] : memref<2x128xf32, #tpu.memory_space<vmem>>, vector<1x128xf32>
    %c1_5 = arith.constant 1 : index
    %6 = memref.load %arg1[%c1_5] : memref<2xf32, #tpu.memory_space<smem>>
    %7 = vector.broadcast %6 : f32 to vector<1x128xf32>
    %8 = arith.mulf %5, %7 : vector<1x128xf32>
    %9 = math.exp %8 : vector<1x128xf32>
    %c1_6 = arith.constant 1 : index
    %c0_7 = arith.constant 0 : index
    %10 = vector.load %arg3[%c1_6, %c0_7] : memref<2x128xf32, #tpu.memory_space<vmem>>, vector<1x128xf32>
    tpu.vector_store %arg3[%c1_6, %c0_7], %9 {strides = array<i32>} : memref<2x128xf32, #tpu.memory_space<vmem>>, vector<1x128xf32>,
    return
  }
  func.func @transform_0(%arg0: i32) -> i32 {
    %c0_i32 = arith.constant 0 : i32
    %c0_i32_0 = arith.constant 0 : i32
    return %c0_i32 : i32
  }
  func.func @transform_1(%arg0: i32) -> (i32, i32) {
    %c0_i32 = arith.constant 0 : i32
    %c0_i32_0 = arith.constant 0 : i32
    return %c0_i32, %arg0 : i32, i32
  }
  func.func @transform_2(%arg0: i32) -> (i32, i32) {
    %c0_i32 = arith.constant 0 : i32
    %c0_i32_0 = arith.constant 0 : i32
    return %c0_i32, %arg0 : i32, i32
  }
}

</mosaic_0001>

<bundles_post_ra>
// kernel: tpu_custom_call.1
= control target key start
LH: loop header
LB: loop body
LE: loop exit
PB: predicated region body
PF: predicated region fallthrough
CT: control target
= control target key end

     0   :  { %7 = vsyncpa [#allocation4], 0  ;;  %s138_s0 = inlined_call_operand.hbm [shape: f32[2], index: 0, kind: input, shape index: {}]   ;;  %s139_s1 = inlined_call_operand.vmem [shape: f32[2,128], index: 1, kind: input, shape index: {}]   ;;  %s140_s2 = inlined_call_operand.hbm [shape: f32[2,128], index: 2, kind: output, shape index: {}]  }
   0x1   :  { %8 = vsyncpa [#allocation3], 0  ;;  %s55_s11 = scalar_lea.hbm %s138_s0, 16 }
   0x2   :  { %p56_p0 = scmp.ne.s32.totalorder %s138_s0, %s55_s11  ;;  %p59_p1 = scmp.lt.u32.totalorder %s55_s11, %s138_s0 }
   0x4   :  { %p61_p2 = pnand %p59_p1, %p56_p0 }
   0x6   :  { %64 = shalt.err (!%p61_p2)
}
   0x7   :  { %s91_s16 = smov [#allocation2]  }
   0x8   :  { %16 = dma.hbm_to_smem %s138_s0, 16, %s91_s16, [#allocation4]  }
   0x9   :  { %87 = dma.done.wait [#allocation4], 16  }
   0xa   :  { %88 = vsyncadd [#allocation4], 4294967280 }
   0xb   :  { %22 = sfence }
   0xc   :  { %s24_s19 = sld [smem:[#allocation2]]  ;;  %s50_s20 = sld [smem:[#allocation2 + $0x1]]  ;;  %v23_v0 = vld [vmem:[%s139_s1] sm:$0x1]  ;;  %v28_v1 = vld [vmem:[%s139_s1 + $0x1] sm:$0x1] }
   0xd   :  { %s92_s0 = smov [#allocation5]  }
   0xe   :  { %s41_s25 = sshll.u32 %s92_s0, 4  ;;  %s42_s25 = int_to_ptr.vmem [resolvable:$true] %s41_s25 }
   0xf   :  { %s65_s26 = scalar_lea.vmem %s42_s25, 32  ;;  %p70_p4 = scmp.lt.s32.totalorder %s42_s25, %s42_s25 }
  0x10   :  { %p66_p3 = scmp.ne.s32.totalorder %s42_s25, %s65_s26  ;;  %p71_p5 = scmp.lt.s32.totalorder %s65_s26, %s65_s26 }
  0x12   :  { %v25_v2 = vstv %s24_s19  ;;  %v30_v4 = vstv %s50_s20  ;;  %p72_p6 = por %p71_p5, %p70_p4 }
  0x13   :  { %v26_v3 = vmul.f32 %v25_v2, %v23_v0  ;;  %v31_v5 = vmul.f32 %v30_v4, %v28_v1 }
  0x14   :  { %p73_p7 = pnand %p72_p6, %p66_p3 }
  0x15   :  { %27 = vst [vmem:[#allocation5] sm:$0x1] %v26_v3  ;;  %v32_v6 = vmul.f32 1.442695, %v31_v5 }
  0x17   :  { %53 = vpow2.f32 %v32_v6 }
  0x21   :  { %v54_v7 = vpop.eup %53 }
  0x22   :  { %34 = vst [vmem:[#allocation5 + $0x1] sm:$0x1] %v54_v7 }
  0x23   :  { %76 = shalt.err (!%p73_p7)
}
  0x24   :  { %s77_s28 = scalar_lea.hbm %s140_s2, 32 }
  0x25   :  { %p78_p8 = scmp.ne.s32.totalorder %s140_s2, %s77_s28  ;;  %p81_p9 = scmp.lt.u32.totalorder %s77_s28, %s140_s2 }
  0x27   :  { %p83_p10 = pnand %p81_p9, %p78_p8 }
  0x29   :  { %86 = shalt.err (!%p83_p10)
}
  0x2a   :  { %44 = dma.vmem_to_hbm [thread:$0]  %s42_s25, 32, %s140_s2, [#allocation3]  }
  0x2b   :  { %89 = dma.done.wait [#allocation3], 32  }
  0x2c   :  { %90 = vsyncadd [#allocation3], 4294967264 }
  0x2d   :  { %48 = vsyncpa [#allocation3], 1 }
  0x2e   :  { %49 = vsyncpa [#allocation4], 1 }

</bundles_post_ra>
